<compile_context>
chip_gen: v5e
topology: v5e:2x2
jax: 0.10.0
libtpu: 0.0.40
codegen_flags: <defaults>
</compile_context>

<pallas_src>
import math

import jax
import jax.numpy as jnp
from jax import lax
from jax.experimental import pallas as pl
from jax.experimental.pallas import tpu as pltpu


LN_EPS = 1e-6  # module uses nn.LayerNorm(dim, eps=1e-06)


def _layer_norm(v, g, b, eps=LN_EPS):
    mu = jnp.mean(v, axis=-1, keepdims=True)
    var = jnp.mean(jnp.square(v - mu), axis=-1, keepdims=True)
    return (v - mu) * lax.rsqrt(var + eps) * g + b


# --------------------------------------------------------------------------
# Kernel 1: LN1 + QKV projection, tiled over (batch, sequence tiles).
# --------------------------------------------------------------------------
def ln_qkv_kernel(x_ref, g_ref, b_ref, wq_ref, wk_ref, wv_ref,
                  bq_ref, bk_ref, bv_ref, q_ref, k_ref, v_ref):
    x = x_ref[0].astype(jnp.float32)                       # (TS, D)
    xn = _layer_norm(x, g_ref[0], b_ref[0])                # f32 elementwise path
    xc = xn.astype(wq_ref.dtype)                           # bf16 MXU operand
    q_ref[0] = (jnp.dot(xc, wq_ref[...], preferred_element_type=jnp.float32)
                + bq_ref[0]).astype(q_ref.dtype)
    k_ref[0] = (jnp.dot(xc, wk_ref[...], preferred_element_type=jnp.float32)
                + bk_ref[0]).astype(k_ref.dtype)
    v_ref[0] = (jnp.dot(xc, wv_ref[...], preferred_element_type=jnp.float32)
                + bv_ref[0]).astype(v_ref.dtype)


# --------------------------------------------------------------------------
# Kernel 2: attention core + output projection + first residual.
# Heads are a leading axis; fori_loop over heads with a (S, D) f32 accumulator
# (per-head Wo accumulation -> no concatenate, one live (S, S) score tile).
# --------------------------------------------------------------------------
def attn_core_kernel(x_ref, q_ref, k_ref, v_ref, woh_ref, bo_ref, x1_ref):
    _, num_heads, S, hd = q_ref.shape                      # (1, H, S, hd)
    D = x_ref.shape[-1]
    scale = 1.0 / (hd ** 0.5)
    cdt = q_ref.dtype

    def head_body(h, acc):
        qh = q_ref[0, h]                                   # (S, hd) aligned tile
        kh = k_ref[0, h]
        vh = v_ref[0, h]
        s = lax.dot_general(qh, kh, (((1,), (1,)), ((), ())),
                            preferred_element_type=jnp.float32) * scale   # (S, S)
        s = s - jnp.max(s, axis=-1, keepdims=True)
        p = jnp.exp(s)
        p = p * pl.reciprocal(jnp.sum(p, axis=-1, keepdims=True), approx=True)
        oh = jnp.dot(p.astype(cdt), vh, preferred_element_type=jnp.float32)  # (S, hd)
        return acc + jnp.dot(oh.astype(cdt), woh_ref[h],
                             preferred_element_type=jnp.float32)             # (S, D)

    attn = lax.fori_loop(0, num_heads, head_body,
                         jnp.zeros((S, D), jnp.float32))
    x1_ref[0] = (x_ref[0].astype(jnp.float32) + attn + bo_ref[0]).astype(x1_ref.dtype)
    # TODO(synk): for long S on v7x (64 MiB VMEM), stream K/V flash-attention
    # style (online softmax over K tiles) and add a q-tile "parallel" grid axis.


# --------------------------------------------------------------------------
# Kernel 3: LN2 + MLP (GELU, exact erf) + second residual, tiled over
# (batch, sequence tiles).
# --------------------------------------------------------------------------
def mlp_block_kernel(x1_ref, g_ref, b_ref, w1_ref, b1_ref, w2_ref, b2_ref, o_ref):
    x1 = x1_ref[0].astype(jnp.float32)                     # (TS, D)
    xn = _layer_norm(x1, g_ref[0], b_ref[0])
    h = jnp.dot(xn.astype(w1_ref.dtype), w1_ref[...],
                preferred_element_type=jnp.float32) + b1_ref[0]
    h = jax.nn.gelu(h, approximate=False)                  # exact erf GELU
    m = jnp.dot(h.astype(w2_ref.dtype), w2_ref[...],
                preferred_element_type=jnp.float32) + b2_ref[0]
    o_ref[0] = (x1 + m).astype(o_ref.dtype)
    # TODO(synk): for very large D on v7x, also tile the MLP hidden dim
    # (W1 columns / W2 rows) with an f32 accumulator over an "arbitrary" axis.


# --------------------------------------------------------------------------
# Wrapper
# --------------------------------------------------------------------------
def _const_spec(shape):
    nd = len(shape)
    return pl.BlockSpec(shape, lambda *_: (0,) * nd)


def _compiler_params(sem, blocks):
    total = sum(math.prod(s) * jnp.dtype(d).itemsize for s, d in blocks)
    # Blocks are double-buffered by the pipeline; add slack, clamp to a limit
    # that is valid on every TPU generation (v7x has 64 MiB VMEM per core).
    limit = int(min(max(2 * total + (4 << 20), 32 << 20), 64 << 20))
    return pltpu.CompilerParams(dimension_semantics=sem, vmem_limit_bytes=limit)


def transformer_block(x, params, num_heads, *, seq_tile=None,
                      compute_dtype=jnp.bfloat16):
    B, S, D = x.shape
    assert D % num_heads == 0, "dim must be divisible by num_heads"
    hd = D // num_heads
    Hm = params["w1"].shape[1]
    f32 = jnp.float32
    cdt = compute_dtype

    # For real models keep D, 3D, 4D multiples of 128 (lane-dense stores).
    if seq_tile is None:
        seq_tile = S if S <= 256 else 256
    assert S % seq_tile == 0 and (seq_tile == S or seq_tile % 8 == 0)
    n_s = S // seq_tile

    # ---- parameter layout plumbing (wrapper-side, free) ----
    wq, wk, wv = (w.astype(cdt) for w in jnp.split(params["wqkv"], 3, axis=1))
    bq, bk, bv = (b.astype(f32) for b in jnp.split(params["bqkv"], 3, axis=1))
    woh = params["wo"].astype(cdt).reshape(num_heads, hd, D)   # per-head Wo rows
    bo = params["bo"].astype(f32)
    ln1_g, ln1_b = params["ln1_g"].astype(f32), params["ln1_b"].astype(f32)
    ln2_g, ln2_b = params["ln2_g"].astype(f32), params["ln2_b"].astype(f32)
    w1, b1 = params["w1"].astype(cdt), params["b1"].astype(f32)
    w2, b2 = params["w2"].astype(cdt), params["b2"].astype(f32)

    # ---- kernel 1: LN1 + QKV projection, grid (B, seq-tiles) ----
    k1_blocks = [((1, seq_tile, D), x.dtype),
                 ((1, D), f32), ((1, D), f32),
                 ((D, D), cdt), ((D, D), cdt), ((D, D), cdt),
                 ((1, D), f32), ((1, D), f32), ((1, D), f32),
                 ((1, seq_tile, D), cdt), ((1, seq_tile, D), cdt),
                 ((1, seq_tile, D), cdt)]
    seq_spec_in = pl.BlockSpec((1, seq_tile, D), lambda b, s: (b, s, 0))
    seq_spec_out = pl.BlockSpec((1, seq_tile, D), lambda b, s: (b, s, 0))
    q, k, v = pl.pallas_call(
        ln_qkv_kernel,
        out_shape=(jax.ShapeDtypeStruct((B, S, D), cdt),) * 3,
        grid=(B, n_s),
        in_specs=[
            seq_spec_in,
            _const_spec((1, D)), _const_spec((1, D)),
            _const_spec((D, D)), _const_spec((D, D)), _const_spec((D, D)),
            _const_spec((1, D)), _const_spec((1, D)), _const_spec((1, D)),
        ],
        out_specs=(seq_spec_out, seq_spec_out, seq_spec_out),
        compiler_params=_compiler_params(("parallel", "parallel"), k1_blocks),
    )(x, ln1_g, ln1_b, wq, wk, wv, bq, bk, bv)

    # Head split is pure layout plumbing; do it in XLA so the attention kernel
    # sees aligned (H, S, hd) tiles instead of in-kernel lane reshapes.
    def to_heads(t):
        return t.reshape(B, S, num_heads, hd).transpose(0, 2, 1, 3)
    q4, k4, v4 = to_heads(q), to_heads(k), to_heads(v)

    # ---- kernel 2: attention core + residual, grid (B,) ----
    k2_blocks = [((1, S, D), x.dtype),
                 ((1, num_heads, S, hd), cdt), ((1, num_heads, S, hd), cdt),
                 ((1, num_heads, S, hd), cdt),
                 ((num_heads, hd, D), cdt), ((1, D), f32),
                 ((1, S, D), x.dtype)]
    x1 = pl.pallas_call(
        attn_core_kernel,
        out_shape=jax.ShapeDtypeStruct((B, S, D), x.dtype),
        grid=(B,),
        in_specs=[
            pl.BlockSpec((1, S, D), lambda b: (b, 0, 0)),
            pl.BlockSpec((1, num_heads, S, hd), lambda b: (b, 0, 0, 0)),
            pl.BlockSpec((1, num_heads, S, hd), lambda b: (b, 0, 0, 0)),
            pl.BlockSpec((1, num_heads, S, hd), lambda b: (b, 0, 0, 0)),
            _const_spec((num_heads, hd, D)),
            _const_spec((1, D)),
        ],
        out_specs=pl.BlockSpec((1, S, D), lambda b: (b, 0, 0)),
        compiler_params=_compiler_params(("parallel",), k2_blocks),
    )(x, q4, k4, v4, woh, bo)

    # ---- kernel 3: LN2 + MLP + residual, grid (B, seq-tiles) ----
    k3_blocks = [((1, seq_tile, D), x.dtype),
                 ((1, D), f32), ((1, D), f32),
                 ((D, Hm), cdt), ((1, Hm), f32),
                 ((Hm, D), cdt), ((1, D), f32),
                 ((1, seq_tile, D), x.dtype)]
    out = pl.pallas_call(
        mlp_block_kernel,
        out_shape=jax.ShapeDtypeStruct((B, S, D), x.dtype),
        grid=(B, n_s),
        in_specs=[
            pl.BlockSpec((1, seq_tile, D), lambda b, s: (b, s, 0)),
            _const_spec((1, D)), _const_spec((1, D)),
            _const_spec((D, Hm)), _const_spec((1, Hm)),
            _const_spec((Hm, D)), _const_spec((1, D)),
        ],
        out_specs=pl.BlockSpec((1, seq_tile, D), lambda b, s: (b, s, 0)),
        compiler_params=_compiler_params(("parallel", "parallel"), k3_blocks),
    )(x1, ln2_g, ln2_b, w1, b1, w2, b2)
    return out


# --------------------------------------------------------------------------
# Pure-JAX reference mirroring the kernel's mixed precision
# (bf16 MXU operands, f32 accumulation and f32 LN/softmax/GELU).
# --------------------------------------------------------------------------
def transformer_block_ref(x, params, num_heads, compute_dtype=jnp.bfloat16):
    B, S, D = x.shape
    hd = D // num_heads
    f32 = jnp.float32
    cdt = compute_dtype
    scale = 1.0 / (hd ** 0.5)

    wq, wk, wv = (w.astype(cdt) for w in jnp.split(params["wqkv"], 3, axis=1))
    bq, bk, bv = (b.astype(f32) for b in jnp.split(params["bqkv"], 3, axis=1))
    woh = params["wo"].astype(cdt).reshape(num_heads, hd, D)

    xn = _layer_norm(x.astype(f32), params["ln1_g"][0], params["ln1_b"][0]).astype(cdt)
    q = (jnp.einsum("bsd,de->bse", xn, wq, preferred_element_type=f32) + bq).astype(cdt)
    k = (jnp.einsum("bsd,de->bse", xn, wk, preferred_element_type=f32) + bk).astype(cdt)
    v = (jnp.einsum("bsd,de->bse", xn, wv, preferred_element_type=f32) + bv).astype(cdt)

    def heads(t):
        return t.reshape(B, S, num_heads, hd).transpose(0, 2, 1, 3)
    q, k, v = heads(q), heads(k), heads(v)

    s = jnp.einsum("bhqd,bhkd->bhqk", q, k, preferred_element_type=f32) * scale
    s = s - jnp.max(s, axis=-1, keepdims=True)
    p = jnp.exp(s)
    p = p / jnp.sum(p, axis=-1, keepdims=True)
    o = jnp.einsum("bhqk,bhkd->bhqd", p.astype(cdt), v, preferred_element_type=f32)
    attn = jnp.einsum("bhqd,hde->bqe", o.astype(cdt), woh,
                      preferred_element_type=f32) + params["bo"][0]
    x1 = x.astype(f32) + attn

    xn2 = _layer_norm(x1, params["ln2_g"][0], params["ln2_b"][0]).astype(cdt)
    h = jnp.einsum("bsd,dh->bsh", xn2, params["w1"].astype(cdt),
                   preferred_element_type=f32) + params["b1"][0]
    h = jax.nn.gelu(h, approximate=False)
    m = jnp.einsum("bsh,hd->bsd", h.astype(cdt), params["w2"].astype(cdt),
                   preferred_element_type=f32) + params["b2"][0]
    return (x1 + m).astype(x.dtype)


def init_params(key, dim, mlp_hidden):
    ks = jax.random.split(key, 6)
    std = 0.02
    return {
        "ln1_g": jnp.ones((1, dim), jnp.float32),
        "ln1_b": jnp.zeros((1, dim), jnp.float32),
        "wqkv": jax.random.normal(ks[0], (dim, 3 * dim), jnp.float32) * std,
        "bqkv": jax.random.normal(ks[1], (1, 3 * dim), jnp.float32) * std,
        "wo": jax.random.normal(ks[2], (dim, dim), jnp.float32) * std,
        "bo": jnp.zeros((1, dim), jnp.float32),
        "ln2_g": jnp.ones((1, dim), jnp.float32),
        "ln2_b": jnp.zeros((1, dim), jnp.float32),
        "w1": jax.random.normal(ks[3], (dim, mlp_hidden), jnp.float32) * std,
        "b1": jax.random.normal(ks[4], (1, mlp_hidden), jnp.float32) * std,
        "w2": jax.random.normal(ks[5], (mlp_hidden, dim), jnp.float32) * std,
        "b2": jnp.zeros((1, dim), jnp.float32),
    }


if __name__ == "__main__":
    B, S, D, NUM_HEADS = 2, 8, 32, 4
    MLP_HIDDEN = 4 * D   # conventional transformer MLP ratio of 4

    key = jax.random.PRNGKey(0)
    kx, kp = jax.random.split(key)
    x = jax.random.normal(kx, (B, S, D), jnp.float32)
    params = init_params(kp, D, MLP_HIDDEN)

    out = jax.block_until_ready(transformer_block(x, params, NUM_HEADS))
    ref = transformer_block_ref(x, params, NUM_HEADS)

    assert out.shape == (B, S, D)
    assert jnp.allclose(out, ref, atol=2e-3, rtol=2e-3), "mismatch vs reference"
    print("KERNEL_OK")
</pallas_src>

<mosaic_0001>
module attributes {stable_mosaic.version = 11 : i64} {
  func.func @ln_qkv_kernel(%arg0: i32, %arg1: i32, %arg2: memref<1x8x32xf32, #tpu.memory_space<vmem>>, %arg3: memref<1x32xf32, #tpu.memory_space<vmem>>, %arg4: memref<1x32xf32, #tpu.memory_space<vmem>>, %arg5: memref<32x32xbf16, #tpu.memory_space<vmem>>, %arg6: memref<32x32xbf16, #tpu.memory_space<vmem>>, %arg7: memref<32x32xbf16, #tpu.memory_space<vmem>>, %arg8: memref<1x32xf32, #tpu.memory_space<vmem>>, %arg9: memref<1x32xf32, #tpu.memory_space<vmem>>, %arg10: memref<1x32xf32, #tpu.memory_space<vmem>>, %arg11: memref<1x8x32xbf16, #tpu.memory_space<vmem>>, %arg12: memref<1x8x32xbf16, #tpu.memory_space<vmem>>, %arg13: memref<1x8x32xbf16, #tpu.memory_space<vmem>>) attributes {dimension_semantics = [#tpu.dimension_semantics<parallel>, #tpu.dimension_semantics<parallel>], iteration_bounds = array<i64: 2, 1>, scalar_prefetch = 0 : i64, scratch_operands = 0 : i64, tpu.core_type = #tpu.core_type<tc>, window_params = [{transform_indices = @transform_0, window_bounds = array<i64: 1, 8, 32>}, {pipeline_mode = #tpu.pipeline_mode<synchronous>, transform_indices = @transform_1, window_bounds = array<i64: 1, 32>}, {pipeline_mode = #tpu.pipeline_mode<synchronous>, transform_indices = @transform_2, window_bounds = array<i64: 1, 32>}, {pipeline_mode = #tpu.pipeline_mode<synchronous>, transform_indices = @transform_3, window_bounds = array<i64: 32, 32>}, {pipeline_mode = #tpu.pipeline_mode<synchronous>, transform_indices = @transform_4, window_bounds = array<i64: 32, 32>}, {pipeline_mode = #tpu.pipeline_mode<synchronous>, transform_indices = @transform_5, window_bounds = array<i64: 32, 32>}, {pipeline_mode = #tpu.pipeline_mode<synchronous>, transform_indices = @transform_6, window_bounds = array<i64: 1, 32>}, {pipeline_mode = #tpu.pipeline_mode<synchronous>, transform_indices = @transform_7, window_bounds = array<i64: 1, 32>}, {pipeline_mode = #tpu.pipeline_mode<synchronous>, transform_indices = @transform_8, window_bounds = array<i64: 1, 32>}, {transform_indices = @transform_9, window_bounds = array<i64: 1, 8, 32>}, {transform_indices = @transform_10, window_bounds = array<i64: 1, 8, 32>}, {transform_indices = @transform_11, window_bounds = array<i64: 1, 8, 32>}]} {
    %c0 = arith.constant 0 : index
    %c0_0 = arith.constant 0 : index
    %c0_1 = arith.constant 0 : index
    %0 = vector.load %arg2[%c0, %c0_0, %c0_1] : memref<1x8x32xf32, #tpu.memory_space<vmem>>, vector<1x8x32xf32>
    %1 = vector.shape_cast %0 : vector<1x8x32xf32> to vector<8x32xf32>
    %c0_2 = arith.constant 0 : index
    %c0_3 = arith.constant 0 : index
    %2 = vector.load %arg3[%c0_2, %c0_3] : memref<1x32xf32, #tpu.memory_space<vmem>>, vector<1x32xf32>
    %3 = vector.shape_cast %2 : vector<1x32xf32> to vector<32xf32>
    %c0_4 = arith.constant 0 : index
    %c0_5 = arith.constant 0 : index
    %4 = vector.load %arg4[%c0_4, %c0_5] : memref<1x32xf32, #tpu.memory_space<vmem>>, vector<1x32xf32>
    %5 = vector.shape_cast %4 : vector<1x32xf32> to vector<32xf32>
    %cst = arith.constant dense<0.000000e+00> : vector<8xf32>
    %6 = vector.multi_reduction <add>, %1, %cst [1] : vector<8x32xf32> to vector<8xf32>
    %7 = vector.shape_cast %6 : vector<8xf32> to vector<8x1xf32>
    %cst_6 = arith.constant 3.200000e+01 : f32
    %8 = vector.broadcast %cst_6 : f32 to vector<8x1xf32>
    %9 = arith.divf %7, %8 : vector<8x1xf32>
    %10 = vector.broadcast %9 : vector<8x1xf32> to vector<8x32xf32>
    %11 = arith.subf %1, %10 : vector<8x32xf32>
    %12 = arith.mulf %11, %11 : vector<8x32xf32>
    %cst_7 = arith.constant dense<0.000000e+00> : vector<8xf32>
    %13 = vector.multi_reduction <add>, %12, %cst_7 [1] : vector<8x32xf32> to vector<8xf32>
    %14 = vector.shape_cast %13 : vector<8xf32> to vector<8x1xf32>
    %cst_8 = arith.constant 3.200000e+01 : f32
    %15 = vector.broadcast %cst_8 : f32 to vector<8x1xf32>
    %16 = arith.divf %14, %15 : vector<8x1xf32>
    %17 = vector.broadcast %9 : vector<8x1xf32> to vector<8x32xf32>
    %18 = arith.subf %1, %17 : vector<8x32xf32>
    %cst_9 = arith.constant 9.99999997E-7 : f32
    %19 = vector.broadcast %cst_9 : f32 to vector<8x1xf32>
    %20 = arith.addf %16, %19 : vector<8x1xf32>
    %21 = math.rsqrt %20 : vector<8x1xf32>
    %22 = vector.broadcast %21 : vector<8x1xf32> to vector<8x32xf32>
    %23 = arith.mulf %18, %22 : vector<8x32xf32>
    %24 = vector.shape_cast %3 : vector<32xf32> to vector<1x32xf32>
    %25 = vector.broadcast %24 : vector<1x32xf32> to vector<8x32xf32>
    %26 = arith.mulf %23, %25 : vector<8x32xf32>
    %27 = vector.shape_cast %5 : vector<32xf32> to vector<1x32xf32>
    %28 = vector.broadcast %27 : vector<1x32xf32> to vector<8x32xf32>
    %29 = arith.addf %26, %28 : vector<8x32xf32>
    %30 = arith.truncf %29 : vector<8x32xf32> to vector<8x32xbf16>
    %c0_10 = arith.constant 0 : index
    %c0_11 = arith.constant 0 : index
    %31 = vector.load %arg5[%c0_10, %c0_11] : memref<32x32xbf16, #tpu.memory_space<vmem>>, vector<32x32xbf16>
    %cst_12 = arith.constant dense<0.000000e+00> : vector<8x32xf32>
    %32 = tpu.matmul %30, %31, %cst_12 {dimension_numbers = #tpu.dot_dimension_numbers<[1], [0], [0], [1], [0, 0, 1, 1], [], []>} : vector<8x32xbf16>, vector<32x32xbf16>, vector<8x32xf32> -> vector<8x32xf32>
    %c0_13 = arith.constant 0 : index
    %c0_14 = arith.constant 0 : index
    %33 = vector.load %arg8[%c0_13, %c0_14] : memref<1x32xf32, #tpu.memory_space<vmem>>, vector<1x32xf32>
    %34 = vector.shape_cast %33 : vector<1x32xf32> to vector<32xf32>
    %35 = vector.shape_cast %34 : vector<32xf32> to vector<1x32xf32>
    %36 = vector.broadcast %35 : vector<1x32xf32> to vector<8x32xf32>
    %37 = arith.addf %32, %36 : vector<8x32xf32>
    %38 = arith.truncf %37 : vector<8x32xf32> to vector<8x32xbf16>
    %c0_15 = arith.constant 0 : index
    %c0_16 = arith.constant 0 : index
    %c0_17 = arith.constant 0 : index
    %39 = vector.load %arg11[%c0_15, %c0_16, %c0_17] : memref<1x8x32xbf16, #tpu.memory_space<vmem>>, vector<1x8x32xbf16>
    %40 = vector.shape_cast %39 : vector<1x8x32xbf16> to vector<8x32xbf16>
    %41 = vector.shape_cast %38 : vector<8x32xbf16> to vector<1x8x32xbf16>
    tpu.vector_store %arg11[%c0_15, %c0_16, %c0_17], %41 {strides = array<i32>} : memref<1x8x32xbf16, #tpu.memory_space<vmem>>, vector<1x8x32xbf16>,
    %c0_18 = arith.constant 0 : index
    %c0_19 = arith.constant 0 : index
    %42 = vector.load %arg6[%c0_18, %c0_19] : memref<32x32xbf16, #tpu.memory_space<vmem>>, vector<32x32xbf16>
    %cst_20 = arith.constant dense<0.000000e+00> : vector<8x32xf32>
    %43 = tpu.matmul %30, %42, %cst_20 {dimension_numbers = #tpu.dot_dimension_numbers<[1], [0], [0], [1], [0, 0, 1, 1], [], []>} : vector<8x32xbf16>, vector<32x32xbf16>, vector<8x32xf32> -> vector<8x32xf32>
    %c0_21 = arith.constant 0 : index
    %c0_22 = arith.constant 0 : index
    %44 = vector.load %arg9[%c0_21, %c0_22] : memref<1x32xf32, #tpu.memory_space<vmem>>, vector<1x32xf32>
    %45 = vector.shape_cast %44 : vector<1x32xf32> to vector<32xf32>
    %46 = vector.shape_cast %45 : vector<32xf32> to vector<1x32xf32>
    %47 = vector.broadcast %46 : vector<1x32xf32> to vector<8x32xf32>
    %48 = arith.addf %43, %47 : vector<8x32xf32>
    %49 = arith.truncf %48 : vector<8x32xf32> to vector<8x32xbf16>
    %c0_23 = arith.constant 0 : index
    %c0_24 = arith.constant 0 : index
    %c0_25 = arith.constant 0 : index
    %50 = vector.load %arg12[%c0_23, %c0_24, %c0_25] : memref<1x8x32xbf16, #tpu.memory_space<vmem>>, vector<1x8x32xbf16>
    %51 = vector.shape_cast %50 : vector<1x8x32xbf16> to vector<8x32xbf16>
    %52 = vector.shape_cast %49 : vector<8x32xbf16> to vector<1x8x32xbf16>
    tpu.vector_store %arg12[%c0_23, %c0_24, %c0_25], %52 {strides = array<i32>} : memref<1x8x32xbf16, #tpu.memory_space<vmem>>, vector<1x8x32xbf16>,
    %c0_26 = arith.constant 0 : index
    %c0_27 = arith.constant 0 : index
    %53 = vector.load %arg7[%c0_26, %c0_27] : memref<32x32xbf16, #tpu.memory_space<vmem>>, vector<32x32xbf16>
    %cst_28 = arith.constant dense<0.000000e+00> : vector<8x32xf32>
    %54 = tpu.matmul %30, %53, %cst_28 {dimension_numbers = #tpu.dot_dimension_numbers<[1], [0], [0], [1], [0, 0, 1, 1], [], []>} : vector<8x32xbf16>, vector<32x32xbf16>, vector<8x32xf32> -> vector<8x32xf32>
    %c0_29 = arith.constant 0 : index
    %c0_30 = arith.constant 0 : index
    %55 = vector.load %arg10[%c0_29, %c0_30] : memref<1x32xf32, #tpu.memory_space<vmem>>, vector<1x32xf32>
    %56 = vector.shape_cast %55 : vector<1x32xf32> to vector<32xf32>
    %57 = vector.shape_cast %56 : vector<32xf32> to vector<1x32xf32>
    %58 = vector.broadcast %57 : vector<1x32xf32> to vector<8x32xf32>
    %59 = arith.addf %54, %58 : vector<8x32xf32>
    %60 = arith.truncf %59 : vector<8x32xf32> to vector<8x32xbf16>
    %c0_31 = arith.constant 0 : index
    %c0_32 = arith.constant 0 : index
    %c0_33 = arith.constant 0 : index
    %61 = vector.load %arg13[%c0_31, %c0_32, %c0_33] : memref<1x8x32xbf16, #tpu.memory_space<vmem>>, vector<1x8x32xbf16>
    %62 = vector.shape_cast %61 : vector<1x8x32xbf16> to vector<8x32xbf16>
    %63 = vector.shape_cast %60 : vector<8x32xbf16> to vector<1x8x32xbf16>
    tpu.vector_store %arg13[%c0_31, %c0_32, %c0_33], %63 {strides = array<i32>} : memref<1x8x32xbf16, #tpu.memory_space<vmem>>, vector<1x8x32xbf16>,
    return
  }
  func.func @transform_0(%arg0: i32, %arg1: i32) -> (i32, i32, i32) {
    %c0_i32 = arith.constant 0 : i32
    %c0_i32_0 = arith.constant 0 : i32
    return %arg0, %arg1, %c0_i32 : i32, i32, i32
  }
  func.func @transform_1(%arg0: i32, %arg1: i32) -> (i32, i32) {
    %c0_i32 = arith.constant 0 : i32
    %c0_i32_0 = arith.constant 0 : i32
    %c0_i32_1 = arith.constant 0 : i32
    return %c0_i32, %c0_i32_0 : i32, i32
  }
  func.func @transform_2(%arg0: i32, %arg1: i32) -> (i32, i32) {
    %c0_i32 = arith.constant 0 : i32
    %c0_i32_0 = arith.constant 0 : i32
    %c0_i32_1 = arith.constant 0 : i32
    return %c0_i32, %c0_i32_0 : i32, i32
  }
  func.func @transform_3(%arg0: i32, %arg1: i32) -> (i32, i32) {
    %c0_i32 = arith.constant 0 : i32
    %c0_i32_0 = arith.constant 0 : i32
    %c0_i32_1 = arith.constant 0 : i32
    return %c0_i32, %c0_i32_0 : i32, i32
  }
  func.func @transform_4(%arg0: i32, %arg1: i32) -> (i32, i32) {
    %c0_i32 = arith.constant 0 : i32
    %c0_i32_0 = arith.constant 0 : i32
    %c0_i32_1 = arith.constant 0 : i32
    return %c0_i32, %c0_i32_0 : i32, i32
  }
  func.func @transform_5(%arg0: i32, %arg1: i32) -> (i32, i32) {
    %c0_i32 = arith.constant 0 : i32
    %c0_i32_0 = arith.constant 0 : i32
    %c0_i32_1 = arith.constant 0 : i32
    return %c0_i32, %c0_i32_0 : i32, i32
  }
  func.func @transform_6(%arg0: i32, %arg1: i32) -> (i32, i32) {
    %c0_i32 = arith.constant 0 : i32
    %c0_i32_0 = arith.constant 0 : i32
    %c0_i32_1 = arith.constant 0 : i32
    return %c0_i32, %c0_i32_0 : i32, i32
  }
  func.func @transform_7(%arg0: i32, %arg1: i32) -> (i32, i32) {
    %c0_i32 = arith.constant 0 : i32
    %c0_i32_0 = arith.constant 0 : i32
    %c0_i32_1 = arith.constant 0 : i32
    return %c0_i32, %c0_i32_0 : i32, i32
  }
  func.func @transform_8(%arg0: i32, %arg1: i32) -> (i32, i32) {
    %c0_i32 = arith.constant 0 : i32
    %c0_i32_0 = arith.constant 0 : i32
    %c0_i32_1 = arith.constant 0 : i32
    return %c0_i32, %c0_i32_0 : i32, i32
  }
  func.func @transform_9(%arg0: i32, %arg1: i32) -> (i32, i32, i32) {
    %c0_i32 = arith.constant 0 : i32
    %c0_i32_0 = arith.constant 0 : i32
    return %arg0, %arg1, %c0_i32 : i32, i32, i32
  }
  func.func @transform_10(%arg0: i32, %arg1: i32) -> (i32, i32, i32) {
    %c0_i32 = arith.constant 0 : i32
    %c0_i32_0 = arith.constant 0 : i32
    return %arg0, %arg1, %c0_i32 : i32, i32, i32
  }
  func.func @transform_11(%arg0: i32, %arg1: i32) -> (i32, i32, i32) {
    %c0_i32 = arith.constant 0 : i32
    %c0_i32_0 = arith.constant 0 : i32
    return %arg0, %arg1, %c0_i32 : i32, i32, i32
  }
}

</mosaic_0001>

<bundles_post_ra>
// kernel: tpu_custom_call.1
= control target key start
LH: loop header
LB: loop body
LE: loop exit
PB: predicated region body
PF: predicated region fallthrough
CT: control target
= control target key end

     0   :  { %s1710_s0 = inlined_call_operand.hbm [shape: f32[2,8,32], index: 0, kind: input, shape index: {}]   ;;  %s1711_s1 = inlined_call_operand.hbm [shape: f32[1,32], index: 1, kind: input, shape index: {}]   ;;  %s1712_s2 = inlined_call_operand.vmem [shape: f32[1,32], index: 2, kind: input, shape index: {}]   ;;  %s1713_s3 = inlined_call_operand.hbm [shape: bf16[32,32], index: 3, kind: input, shape index: {}]   ;;  %s1714_s4 = inlined_call_operand.hbm [shape: bf16[32,32], index: 4, kind: input, shape index: {}]   ;;  %s1715_s5 = inlined_call_operand.hbm [shape: bf16[32,32], index: 5, kind: input, shape index: {}]   ;;  %s1716_s6 = inlined_call_operand.vmem [shape: f32[1,32], index: 6, kind: input, shape index: {}]   ;;  %s1717_s7 = inlined_call_operand.vmem [shape: f32[1,32], index: 7, kind: input, shape index: {}]   ;;  %s1718_s8 = inlined_call_operand.vmem [shape: f32[1,32], index: 8, kind: input, shape index: {}]   ;;  %s1719_s9 = inlined_call_operand.hbm [shape: bf16[2,8,32], index: 9, kind: output, shape index: {0}]   ;;  %s1720_s10 = inlined_call_operand.hbm [shape: bf16[2,8,32], index: 10, kind: output, shape index: {1}]   ;;  %s1721_s11 = inlined_call_operand.hbm [shape: bf16[2,8,32], index: 11, kind: output, shape index: {2}]  }
   0x1   :  { %1730 = sst [smem:[#allocation24_spill]] %s1710_s0 }
   0x2   :  { %1731 = sst [smem:[#allocation25_spill]] %s1711_s1 }
   0x3   :  { %1732 = sst [smem:[#allocation26_spill]] %s1712_s2 }
   0x4   :  { %1733 = sst [smem:[#allocation27_spill]] %s1713_s3 }
   0x5   :  { %1734 = sst [smem:[#allocation28_spill]] %s1714_s4 }
   0x6   :  { %1735 = sst [smem:[#allocation29_spill]] %s1715_s5 }
   0x7   :  { %17 = vsyncpa [#allocation3], 0 }
   0x8   :  { %19 = vsyncpa [#allocation3 + $0x1], 0 }
   0x9   :  { %20 = vsyncpa [#allocation6], 0 }
   0xa   :  { %21 = vsyncpa [#allocation9], 0 }
   0xb   :  { %22 = vsyncpa [#allocation4], 0 }
   0xc   :  { %24 = vsyncpa [#allocation4 + $0x1], 0 }
   0xd   :  { %25 = vsyncpa [#allocation13], 0 }
   0xe   :  { %27 = vsyncpa [#allocation13 + $0x1], 0  ;;  %s1453_s17 = smov 0   ;;  %s1455_s18 = smov 0  }
   0xf   :  { %s1457_s19 = smov 0   ;;  %s1459_s20 = smov 0  }
  0x10   :  { %s1461_s21 = smov 0   ;;  %s1463_s22 = smov 0  }
  0x11 LB: > { %1736 = sst [smem:[#allocation20_spill]] %s1380_s21  ;;  %s1484_s23 = sadd.s32 4294967295, %s1384_s22   ;;  %s1384_s22 = sphi %s1463_s22, %s33_s22   ;;  %s1380_s21 = sphi %s1461_s21, %s1760_s21   ;;  %s1376_s20 = sphi %s1459_s20, %s1759_s20   ;;  %s1372_s19 = sphi %s1457_s19, %s1763_s19   ;;  %s1368_s18 = sphi %s1455_s18, %s1762_s18   ;;  %s1364_s17 = sphi %s1453_s17, %s1761_s17  }
  0x12   : > { %p901_p0 = scmp.ge.s32.totalorder %s1384_s22, 1  ;;  %p68_p1 = scmp.eq.s32.totalorder %s1484_s23, 0 }
  0x13   : > { %p330_p2 = scmp.lt.s32.totalorder %s1384_s22, 3  ;;  %s1737_s1 = sld [smem:[#allocation25_spill]] }
  0x14   : > { %p906_p4 = scmp.ge.s32.totalorder %s1384_s22, 2  ;;  %s1386_s28 = smov [#allocation5]  }
  0x15   : > { %p1492_p3 = pnand %p901_p0, %p330_p2  ;;  %s344_s29 = sshll.u32 %s1386_s28, 4  ;;  %s345_s29 = int_to_ptr.vmem [resolvable:$true] %s344_s29 }
  0x16   : > { %s1740_s4 = sld [smem:[#allocation28_spill]]  ;;  %s1387_s15 = smov [#allocation8]  }
  0x17   : > { %p983_p5 = pneg %p1492_p3  ;;  %s372_s16 = sshll.u32 %s1387_s15, 4  ;;  %s373_s16 = int_to_ptr.vmem [resolvable:$true] %s372_s16 }
  0x18   : > { %s1741_s3 = sld [smem:[#allocation27_spill]]  ;;  %s1389_s12 = smov 4  }
  0x19   : > { %s342_s26 = sshll.u32 %s1737_s1, 4  ;;  %p1501_p6 = pnand %p983_p5, %p68_p1  ;;  %s343_s26 = int_to_ptr.hbm [resolvable:$true] %s342_s26 }
  0x1a   : > { %s1388_s1 = smov 64   ;;  %s1742_s5 = sld [smem:[#allocation29_spill]] }
  0x1b   : > { %986 = dma.hbm_to_vmem [thread:$0]  (!%p1501_p6), %s343_s26, 16, %s345_s29, [#allocation6]  }
  0x1c   : > { %s370_s14 = sshll.u32 %s1740_s4, 4  ;;  %s1390_s15 = smov [#allocation7]   ;;  %s371_s14 = int_to_ptr.hbm [resolvable:$true] %s370_s14 }
  0x1d   : > { %992 = dma.hbm_to_vmem [thread:$0]  (!%p1501_p6), %s371_s14, 256, %s373_s16, [#allocation9], %s1388_s1, %s1388_s1, %s1389_s12  }
  0x1e   : > { %s356_s28 = sshll.u32 %s1741_s3, 4  ;;  %s358_s24 = sshll.u32 %s1390_s15, 4  ;;  %s357_s28 = int_to_ptr.hbm [resolvable:$true] %s356_s28  ;;  %s359_s24 = int_to_ptr.vmem [resolvable:$true] %s358_s24 }
  0x1f   : > { %989 = dma.hbm_to_vmem [thread:$0]  (!%p1501_p6), %s357_s28, 256, %s359_s24, [#allocation6], %s1388_s1, %s1388_s1, %s1389_s12  }
  0x20   : > { %s384_s29 = sshll.u32 %s1742_s5, 4  ;;  %s1391_s25 = smov [#allocation10]   ;;  %s385_s29 = int_to_ptr.hbm [resolvable:$true] %s384_s29 }
  0x21   : > { %s386_s3 = sshll.u32 %s1391_s25, 4  ;;  %s45_s14 = sadd.s32 1, %s1380_s21  ;;  %s387_s3 = int_to_ptr.vmem [resolvable:$true] %s386_s3 }
  0x22   : > { %995 = dma.hbm_to_vmem [thread:$0]  (!%p1501_p6), %s385_s29, 256, %s387_s3, [#allocation9], %s1388_s1, %s1388_s1, %s1389_s12  }
  0x23   : > { %s1723_s16 = sadd.s32 4294967294, %s1384_s22   ;;  %p47_p7 = scmp.ge.s32.totalorder %s45_s14, 2 }
  0x24   : > { %s54_s13 = sadd.s32 1, %s1372_s19  ;;  %p61_p8 = scmp.ne.s32.totalorder %s1372_s19, %s1368_s18 }
  0x25   : > { %s1765_s14 = smov (%p47_p7, %s45_s14), 0  ;;  %p62_p9 = scmp.eq.s32.totalorder %s1384_s22, 0 }
  0x26   : > { %1743 = sst [smem:[#allocation21_spill]] %s1765_s14  ;;  %p67_p10 = scmp.ne.s32.totalorder %s1368_s18, %s1364_s17 }
  0x27   : > { %s49_s28 = ssub.s32 %s1380_s21, %s1765_s14  ;;  %p261_p11 = scmp.eq.s32.totalorder %s1484_s23, 1 }
  0x28   : > { %p52_p12 = scmp.eq.s32.totalorder %s49_s28, 0  ;;  %p1537_p13 = por %p68_p1, %p67_p10 }
  0x29   : > { %p1541_p0 = por %p261_p11, %p61_p8  ;;  %p267_p2 = scmp.eq.s32.totalorder %s1723_s16, 1 }
  0x2a   : > { %s1548_s3 = scalar_select %p52_p12, %s1372_s19, %s54_s13  }
  0x2b   : > { %p63_p5 = por %p62_p9, %p61_p8  ;;  %p1550_p6 = por %p267_p2, %p67_p10 }
  0x2c   : > { %s409_s26 = sand.u32 1, %s1372_s19   ;;  %s908_s29 = sshll.u32 %s1380_s21, 3 }
  0x2d   : > { %p1014_p7 = scmp.lt.s32.totalorder %s1384_s22, 2  ;;  %s907_s15 = sshll.u32 %s409_s26, 3 }
  0x2e   : > { %s1747_s0 = sld [smem:[#allocation24_spill]]  ;;  %s413_s5 = scalar_lea.vmem [#allocation2], %s907_s15 }
  0x2f   : > { %s422_s14 = sshll.u32 %s413_s5, 4  ;;  %p997_p11 = pnand %p1014_p7, %p63_p5  ;;  %s423_s14 = int_to_ptr.vmem [resolvable:$true] %s422_s14 }
  0x30   : > { %s410_s13 = scalar_lea.sflag [#allocation3], %s409_s26 }
  0x32   : > { %431 = sbr.rel (%p1492_p3) target bundleno = 501 (0x1f5), region = 56 }
  0x34   : > { %s418_s28 = scalar_lea.hbm %s1747_s0, %s908_s29 }
  0x35   : > { %s420_s4 = sshll.u32 %s418_s28, 4  ;;  %s421_s4 = int_to_ptr.hbm [resolvable:$true] %s420_s4 }
  0x36   : > { %999 = dma.hbm_to_vmem [thread:$0]  (!%p997_p11), %s421_s4, 128, %s423_s14, %s410_s13  }
  0x37   : > { %s1563_s16 = sand.u32 1, %s1368_s18  }
  0x38   : > { %s910_s21 = sshll.u32 %s1563_s16, 3  ;;  %s434_s24 = scalar_lea.sflag [#allocation3], %s1563_s16 }
  0x39   : > { %s437_s29 = scalar_lea.vmem [#allocation2], %s910_s21 }
  0x3a   : > { %1343 = dma.done.wait (%p1537_p13), %s434_s24, 128  }
  0x3b   : > { %1345 = vsyncadd (%p1537_p13), %s434_s24, 4294967168 }
  0x3c   : > { %1347 = dma.done.wait (%p68_p1), [#allocation6], 272  }
  0x3d   : > { %1349 = vsyncadd (%p68_p1), [#allocation6], 4294967024 }
  0x3e   : > { %1351 = dma.done.wait (%p68_p1), [#allocation9], 512  }
  0x3f   : > { %1353 = vsyncadd (%p68_p1), [#allocation9], 4294966784  ;;  %vm511_vm0 = vcmask 261120   ;;  %v508_v0 = vld [vmem:[%s437_s29] sm:$0xff]  ;;  %v1392_v2 = vmov 32.0   ;;  %v953_v17 = vld [vmem:[#allocation7] sm:$0xff] }
  0x40   : > { %v512_v1 = vsel %vm511_vm0, %v508_v0, 0.0  ;;  %1080 = vrcp.f32 %v1392_v2  ;;  %v954_v14 = vld [vmem:[#allocation7 + $0x8] sm:$0xff]  ;;  %v956_v15 = vld [vmem:[#allocation8 + $0x8] sm:$0xff]  ;;  %v955_v18 = vld [vmem:[#allocation8] sm:$0xff]  ;;  %s1748_s2 = sld [smem:[#allocation26_spill]]  ;;  %s1588_s21 = sshll.u32 %s1563_s16, 2 }
  0x41   : > { %513 = vadd.xlane.f32.xlu0 %v512_v1  ;;  %v958_v16 = vld [vmem:[#allocation10 + $0x8] sm:$0xff]  ;;  %579 = vmatpush.bf16.msra.mxu0 %v954_v14  ;;  %v957_v19 = vld [vmem:[#allocation10] sm:$0xff]  ;;  %v1075_v29 = vld [vmem:[#allocation5] ss:$0 sm:$0xff]  ;;  %s948_s27 = sshll.u32 %s1376_s20, 2  ;;  %s664_s14 = sand.u32 1, %s1484_s23  }
  0x42   : > { %615 = vmatpush.bf16.msra.mxu1 %v956_v15  ;;  %650 = vmatpush.bf16.msra.mxu2 %v958_v16  ;;  %v1077_v36 = vld [vmem:[%s1716_s6] ss:$0 sm:$0xff]  ;;  %s696_s24 = scalar_lea.hbm %s1720_s10, %s948_s27  ;;  %s499_s29 = scalar_lea.vmem [#allocation12], %s1588_s21  ;;  %vm587_vm5 = vcmask 257024  }
  0x43   : > { %v1078_v37 = vld [vmem:[%s1717_s7] ss:$0 sm:$0xff]  ;;  %s1602_s4 = sshll.u32 %s499_s29, 4  ;;  %s681_s20 = scalar_lea.hbm %s1719_s9, %s948_s27  ;;  %s699_s4 = int_to_ptr.vmem [resolvable:$true] %s1602_s4 }
  0x44   : > { %s1608_s23 = sshll.u32 %s696_s24, 4  ;;  %s1725_s30 = scalar_lea.vmem [#allocation11], %s1588_s21  ;;  %v1079_v44 = vld [vmem:[%s1718_s8] ss:$0 sm:$0xff]  ;;  %s701_s23 = int_to_ptr.hbm [resolvable:$true] %s1608_s23 }
  0x45   : > { %580 = vmatpush.bf16.msra.mxu0 %v953_v17  ;;  %s1613_s26 = sshll.u32 %s1725_s30, 4  ;;  %s1615_s15 = sshll.u32 %s681_s20, 4 }
  0x46   : > { %v1081_v3 = vpop.eup %1080  ;;  %616 = vmatpush.bf16.msra.mxu1 %v955_v18  ;;  %651 = vmatpush.bf16.msra.mxu2 %v957_v19  ;;  %v1076_v32 = vld [vmem:[%s1748_s2] ss:$0 sm:$0xff]  ;;  %1749 = sst [smem:[#allocation22_spill]] %s1613_s26  ;;  %s711_s28 = scalar_lea.hbm %s1721_s11, %s948_s27 }
  0x47   : > { %v516_v4 = vmul.f32 32.0, %v1081_v3  ;;  %vm520_vm1 = vweird.f32 %v1081_v3  ;;  %1750 = sst [smem:[#allocation23_spill]] %s1615_s15  ;;  %s1729_s5 = scalar_lea.vmem [#allocation14], %s1588_s21 }
  0x48   : > { %s1630_s20 = sshll.u32 %s1729_s5, 4  ;;  %s1632_s30 = sshll.u32 %s711_s28, 4  ;;  %s714_s20 = int_to_ptr.vmem [resolvable:$true] %s1630_s20  ;;  %s716_s30 = int_to_ptr.hbm [resolvable:$true] %s1632_s30 }
  0x49   : > { %v517_v5 = vsub.f32 1.0, %v516_v4  ;;  %s1634_s0 = scalar_lea.sflag [#allocation13], %s664_s14  ;;  %s1248_s27 = sshra.s32 %s701_s23, 4  ;;  %s1249_s27 = int_to_ptr.hbm [resolvable:$true] %s1248_s27 }
  0x4a   : > { %s1250_s25 = scalar_lea.hbm %s1249_s27, 4  ;;  %s1254_s26 = scalar_lea.hbm %s1720_s10, 8 }
  0x4b   : > { %v518_v6 = vmul.f32 %v1081_v3, %v517_v5  ;;  %p1251_p1 = scmp.ne.s32.totalorder %s1249_s27, %s1250_s25  ;;  %p1255_p9 = scmp.lt.s32.totalorder %s1249_s27, %s1720_s10 }
  0x4c   : > { %p1256_p10 = scmp.lt.s32.totalorder %s1254_s26, %s1250_s25 }
  0x4d   : > { %v519_v7 = vadd.f32 %v1081_v3, %v518_v6  ;;  %p1252_p3 = pnand %p1251_p1, %p1541_p0 }
  0x4e   : > { %p1257_p12 = por %p1256_p10, %p1255_p9 }
  0x4f   : > { %v521_v8 = vsel %vm520_vm1, %v1081_v3, %v519_v7  ;;  %p1253_p8 = pneg %p1252_p3 }
  0x51   : > { %p1258_p13 = pnand %p1257_p12, %p1253_p8 }
  0xb4   : > { %v514_v9 = vpop.xlane.xlu0 %513 }
  0xb5   : > { %v522_v10 = vmul.f32 %v521_v8, %v514_v9 }
  0xb7   : > { %v523_v11 = vsub.f32 %v508_v0, %v522_v10 }
  0xb9   : > { %v524_v12 = vmul.f32 %v523_v11, %v523_v11 }
  0xbb   : > { %v525_v13 = vsel %vm511_vm0, %v524_v12, 0.0 }
  0xbc   : > { %526 = vadd.xlane.f32.xlu0 %v525_v13 }
 0x12f   : > { %v527_v20 = vpop.xlane.xlu0 %526 }
 0x130   : > { %v528_v21 = vmul.f32 %v527_v20, %v521_v8 }
 0x132   : > { %v529_v22 = vadd.f32 1e-06, %v528_v21 }
 0x134   : > { %1082 = vrsqrt.f32 %v529_v22  ;;  %vm536_vm3 = vweird.f32 %v529_v22 }
 0x13a   : > { %v1083_v23 = vpop.eup %1082 }
 0x13b   : > { %v531_v24 = vmul.f32 %v1083_v23, %v529_v22  ;;  %vm537_vm2 = vweird.f32 %v1083_v23 }
 0x13c   : > { %vm538_vm4 = vmor %vm536_vm3, %vm537_vm2 }
 0x13d   : > { %v532_v25 = vmul.f32 %v1083_v23, %v531_v24 }
 0x13f   : > { %v533_v26 = vmul.f32 0.5, %v532_v25 }
 0x141   : > { %v534_v27 = vsub.f32 1.5, %v533_v26 }
 0x143   : > { %v535_v28 = vmul.f32 %v1083_v23, %v534_v27 }
 0x145   : > { %v539_v30 = vsel %vm538_vm4, %v1083_v23, %v535_v28 }
 0x146   : > { %v540_v31 = vmul.f32 %v539_v30, %v523_v11 }
 0x148   : > { %v544_v33 = vmul.f32 %v1075_v29, %v540_v31 }
 0x14a   : > { %v548_v34 = vadd.f32 %v1076_v32, %v544_v33 }
 0x14c   : > { %v549_v35 = vpack.c.bf16 %v548_v34, %v548_v34 }
 0x14e   : > { %926 = vmatmul.msk.bf16.vlgmr.msra.gmra.mxu0 %vm511_vm0, %v549_v35  ;;  %935 = vmatmul.msk.bf16.vlgmr.msra.gmra.mxu1 %vm511_vm0, %v549_v35 }
 0x14f   : > { %944 = vmatmul.msk.bf16.vlgmr.msra.gmra.mxu2 %vm511_vm0, %v549_v35 }
 0x1cb   : > { %v582_v38 = vpop.f32.mrf.mxu0  ;;  %v618_v39 = vpop.f32.mrf.mxu1 }
 0x1cc   : > { %v583_v40 = vadd.f32 %v1077_v36, %v582_v38  ;;  %v619_v41 = vadd.f32 %v1078_v37, %v618_v39 }
 0x1ce   : > { %v586_v42 = vpack.c.bf16 %v583_v40, %v583_v40  ;;  %v622_v43 = vpack.c.bf16 %v619_v41, %v619_v41 }
 0x1d0   : > { %623 = vst.msk [vmem:[%s499_s29] sm:$0xf] %vm587_vm5, %v622_v43 }
 0x1d1   : > { %1261 = shalt.err (!%p1258_p13)
}
 0x1d2   : > { %s1751_s14 = sld [smem:[#allocation23_spill]]  ;;  %s1752_s28 = scalar_lea.vmem [#allocation11], %s1588_s21  ;;  %v653_v45 = vpop.f32.mrf.mxu2 }
 0x1d3   : > { %978 = dma.vmem_to_hbm [thread:$0]  (%p1541_p0), %s699_s4, 64, %s701_s23, %s1634_s0   ;;  %588 = vst.msk [vmem:[%s1752_s28] sm:$0xf] %vm587_vm5, %v586_v42 }
 0x1d4   : > { %s660_s15 = scalar_lea.sflag [#allocation4], %s1563_s16  ;;  %s1282_s29 = scalar_lea.hbm %s1719_s9, 8 }
 0x1d8   : > { %s1753_s27 = int_to_ptr.hbm [resolvable:$true] %s1751_s14 }
 0x1d9   : > { %s1276_s26 = sshra.s32 %s1753_s27, 4  ;;  %s1277_s26 = int_to_ptr.hbm [resolvable:$true] %s1276_s26 }
 0x1da   : > { %s1278_s25 = scalar_lea.hbm %s1277_s26, 4  ;;  %p1283_p11 = scmp.lt.s32.totalorder %s1277_s26, %s1719_s9 }
 0x1db   : > { %p1279_p2 = scmp.ne.s32.totalorder %s1277_s26, %s1278_s25  ;;  %p1284_p1 = scmp.lt.s32.totalorder %s1282_s29, %s1278_s25 }
 0x1dd   : > { %p1280_p5 = pnand %p1279_p2, %p1541_p0  ;;  %p1285_p3 = por %p1284_p1, %p1283_p11 }
 0x1df   : > { %p1281_p7 = pneg %p1280_p5 }
 0x1e1   : > { %p1286_p8 = pnand %p1285_p3, %p1281_p7 }
 0x1e3   : > { %1289 = shalt.err (!%p1286_p8)
}
 0x1e4   : > { %s1754_s16 = smov %s1753_s27  ;;  %s1755_s4 = sld [smem:[#allocation22_spill]]  ;;  %v654_v46 = vadd.f32 %v1079_v44, %v653_v45  ;;  %v584_v47 = vpop.f32.mrf.mxu0  ;;  %v620_v48 = vpop.f32.mrf.mxu1 }
 0x1e5   : > { %s1757_s2 = scalar_lea.vmem [#allocation14], %s1588_s21  ;;  %s1304_s5 = sshra.s32 %s716_s30, 4  ;;  %s1305_s5 = int_to_ptr.hbm [resolvable:$true] %s1304_s5 }
 0x1e6   : > { %v657_v49 = vpack.c.bf16 %v654_v46, %v654_v46  ;;  %s1306_s28 = scalar_lea.hbm %s1305_s5, 4  ;;  %p1311_p13 = scmp.lt.s32.totalorder %s1305_s5, %s1721_s11 }
 0x1e7   : > { %p1307_p9 = scmp.ne.s32.totalorder %s1305_s5, %s1306_s28 }
 0x1e8   : > { %658 = vst.msk [vmem:[%s1757_s2] sm:$0xf] %vm587_vm5, %v657_v49 }
 0x1e9   : > { %p1308_p10 = pnand %p1307_p9, %p1541_p0 }
 0x1ea   : > { %s1756_s23 = int_to_ptr.vmem [resolvable:$true] %s1755_s4 }
 0x1eb   : > { %977 = dma.vmem_to_hbm [thread:$0]  (%p1541_p0), %s1756_s23, 64, %s1754_s16, %s660_s15  }
 0x1ec   : > { %p1309_p12 = pneg %p1308_p10  ;;  %s1310_s15 = scalar_lea.hbm %s1721_s11, 8 }
 0x1ed   : > { %p1312_p2 = scmp.lt.s32.totalorder %s1310_s15, %s1306_s28 }
 0x1ef   : > { %p1313_p5 = por %p1312_p2, %p1311_p13 }
 0x1f1   : > { %p1314_p7 = pnand %p1313_p5, %p1309_p12 }
 0x1f3   : > { %1317 = shalt.err (!%p1314_p7)
}
 0x1f4   : > { %979 = dma.vmem_to_hbm [thread:$0]  (%p1541_p0), %s714_s20, 64, %s716_s30, %s1634_s0   ;;  %v655_v50 = vpop.f32.mrf.mxu2 }
 0x1f5 PF: > { %s727_s21 = sand.u32 1, %s1364_s17   ;;  %p1001_p11 = pnand %p906_p4, %p1550_p6 }
 0x1f6   : > { %s728_s13 = scalar_lea.sflag [#allocation4], %s727_s21 }
 0x1f7   : > { %p1002_p1 = pneg %p1001_p11 }
 0x1f9   : > { %1355 = dma.done.wait (%p1002_p1), %s728_s13, 64  }
 0x1fa   : > { %1357 = vsyncadd (%p1002_p1), %s728_s13, 4294967232  ;;  %s1758_s24 = sadd.s32 4294967294, %s1384_s22  }
 0x1fb   : > { %s737_s29 = sand.u32 1, %s1758_s24  }
 0x1fc   : > { %s738_s16 = scalar_lea.sflag [#allocation13], %s737_s29 }
 0x1fd   : > { %1359 = dma.done.wait (%p1002_p1), %s738_s16, 128  }
 0x1fe   : > { %1361 = vsyncadd (%p1002_p1), %s738_s16, 4294967168  ;;  %s33_s22 = sadd.s32 1, %s1384_s22   ;;  %s1759_s20 = sld [smem:[#allocation20_spill]] }
 0x1ff   : > { %p30_p0 = scmp.ge.s32.totalorder %s33_s22, 4   ;;  %s1760_s21 = sld [smem:[#allocation21_spill]] }
 0x200   : > { %s1761_s17 = smov %s1368_s18  ;;  %s1762_s18 = smov %s1372_s19 }
 0x201   : > { %s1763_s19 = smov %s1548_s3  ;;  %32 = sbr.rel (!%p30_p0) target bundleno = 17 (0x11), region = 149 }
 0x206   :  { %754 = vsyncpa [#allocation3], 1 }
 0x207   :  { %756 = vsyncpa [#allocation3 + $0x1], 1 }
 0x208   :  { %757 = vsyncpa [#allocation6], 1 }
 0x209   :  { %758 = vsyncpa [#allocation9], 1 }
 0x20a   :  { %759 = vsyncpa [#allocation4], 1 }
 0x20b   :  { %761 = vsyncpa [#allocation4 + $0x1], 1 }
 0x20c   :  { %762 = vsyncpa [#allocation13], 1 }
 0x20d   :  { %764 = vsyncpa [#allocation13 + $0x1], 1 }

</bundles_post_ra>
